<compile_context>
chip_gen: v7x
topology: tpu7x:2x2x1
jax: 0.10.0
libtpu: 0.0.40
codegen_flags: <defaults>
</compile_context>

<pallas_src>
import math

import jax
import jax.numpy as jnp
from jax.experimental import pallas as pl
from jax.experimental.pallas import tpu as pltpu

_LANES = 128  # vreg lane width on every TPU generation


def _identity_kernel(x_ref, o_ref):
    # Full-tile load + full-tile store: unmasked vld/vst, nothing else.
    o_ref[...] = x_ref[...]


def _sublanes_for(dtype) -> int:
    # Native packed sublane count: 8 for 4-byte, 16 for 2-byte, 32 for 1-byte.
    itemsize = jnp.dtype(dtype).itemsize
    return max(8, 32 // max(1, itemsize))


def silence(x, *, max_rows_per_step: int = 8192):
    """Identity forward of `Silence`.

    For lane/sublane-aligned sizes the data is routed through a single
    lane-dense Pallas copy kernel (aliased in-place, tiled along a
    'parallel' grid axis).  For any other size the optimal implementation
    of an identity op is to do nothing, so x is returned directly rather
    than paying a pad + slice round-trip.
    """
    n = math.prod(x.shape) if x.shape else 1
    sublanes = _sublanes_for(x.dtype)

    if n == 0 or n % _LANES != 0 or (n // _LANES) % sublanes != 0:
        # Zero HBM traffic beats any copy kernel; semantics are unchanged.
        return x

    rows = n // _LANES
    x2d = x.reshape(rows, _LANES)  # contiguous flatten: metadata-only in XLA

    # ~4 MiB/step for f32; always a multiple of the packed sublane count.
    row_tile = min(rows, max_rows_per_step)
    row_tile = max(sublanes, (row_tile // sublanes) * sublanes)
    # v7x has 2 TensorCores: give the 'parallel' axis at least 2 steps
    # whenever the input is big enough to split.
    if pl.cdiv(rows, row_tile) < 2 and rows >= 2 * sublanes:
        row_tile = max(sublanes, ((rows // 2) // sublanes) * sublanes)

    grid = (pl.cdiv(rows, row_tile),)  # ragged last block is masked, no pad

    out2d = pl.pallas_call(
        _identity_kernel,
        grid=grid,
        in_specs=[pl.BlockSpec((row_tile, _LANES), lambda i: (i, 0))],
        out_specs=pl.BlockSpec((row_tile, _LANES), lambda i: (i, 0)),
        out_shape=jax.ShapeDtypeStruct((rows, _LANES), x.dtype),
        # Output aliases the input buffer: no second HBM allocation; with a
        # donated input at the jit boundary XLA can drop the copy entirely.
        input_output_aliases={0: 0},
        compiler_params=pltpu.CompilerParams(
            dimension_semantics=("parallel",),
            vmem_limit_bytes=32 * 1024 * 1024,  # headroom for v5e's 16 MiB default
        ),
    )(x2d)

    return out2d.reshape(x.shape)


# ----------------------------------------------------------------------------
if __name__ == "__main__":
    key = jax.random.PRNGKey(0)

    # Same NCHW-style small shape as the module's typical input:
    # batch=2, channels=4, 16x16 -> 2048 elements = 16 rows x 128 lanes.
    x = jax.random.normal(key, (2, 4, 16, 16), jnp.float32)

    y = jax.jit(silence)(x)
    jax.block_until_ready(y)

    assert y.shape == x.shape, (y.shape, x.shape)
    assert y.dtype == x.dtype, (y.dtype, x.dtype)
    assert jnp.array_equal(y, x), "Silence must be an exact identity"
    print("KERNEL_OK")
</pallas_src>

<mosaic_0001>
module attributes {stable_mosaic.version = 11 : i64} {
  func.func @_identity_kernel(%arg0: i32, %arg1: memref<8x128xf32, #tpu.memory_space<vmem>>, %arg2: memref<8x128xf32, #tpu.memory_space<vmem>>) attributes {dimension_semantics = [#tpu.dimension_semantics<parallel>], iteration_bounds = array<i64: 2>, scalar_prefetch = 0 : i64, scratch_operands = 0 : i64, tpu.core_type = #tpu.core_type<tc>, window_params = [{transform_indices = @transform_0, window_bounds = array<i64: 8, 128>}, {transform_indices = @transform_1, window_bounds = array<i64: 8, 128>}]} {
    %c0 = arith.constant 0 : index
    %c0_0 = arith.constant 0 : index
    %0 = vector.load %arg1[%c0, %c0_0] : memref<8x128xf32, #tpu.memory_space<vmem>>, vector<8x128xf32>
    %c0_1 = arith.constant 0 : index
    %c0_2 = arith.constant 0 : index
    %1 = vector.load %arg2[%c0_1, %c0_2] : memref<8x128xf32, #tpu.memory_space<vmem>>, vector<8x128xf32>
    tpu.vector_store %arg2[%c0_1, %c0_2], %0 {strides = array<i32>} : memref<8x128xf32, #tpu.memory_space<vmem>>, vector<8x128xf32>,
    return
  }
  func.func @transform_0(%arg0: i32) -> (i32, i32) {
    %c0_i32 = arith.constant 0 : i32
    %c0_i32_0 = arith.constant 0 : i32
    return %arg0, %c0_i32 : i32, i32
  }
  func.func @transform_1(%arg0: i32) -> (i32, i32) {
    %c0_i32 = arith.constant 0 : i32
    %c0_i32_0 = arith.constant 0 : i32
    return %arg0, %c0_i32 : i32, i32
  }
}

</mosaic_0001>

<bundles_post_ra>
// kernel: silence.1
= control target key start
LH: loop header
LB: loop body
LE: loop exit
PB: predicated region body
PF: predicated region fallthrough
CT: control target
= control target key end

     0   :  { %s188_s6 = smov 0   ;;  %s208_s0 = inlined_call_operand.vmem [shape: f32[16,128], index: 0, kind: input, shape index: {}, may-alias: {0,1}]   ;;  %s209_s1 = inlined_call_operand.vmem [shape: f32[16,128], index: 1, kind: output, shape index: {}, may-alias: {0,1}]  }
   0x1 LB: > { %s167_s7 = sadd.s32 4294967295, %s190_s6   ;;  %p171_p0 = scmp.ge.s32.totalorder %s190_s6, 1  ;;  %s190_s6 = sphi %s188_s6, %s11_s6  }
   0x2   : > { %p86_p1 = scmp.lt.s32.totalorder %s190_s6, 3 }
   0x4   : > { %p87_p2 = pnand %p171_p0, %p86_p1 }
   0x5   : > { %p104_p3 = scmp.lt.s32.totalorder (!%p87_p2), %s167_s7, 1 }
   0x6   : > { %90 = sbr.rel (%p87_p2) target bundleno = 18 (0x12), region = 24 }
   0xd   : > { %s211_s7 = smov (!%p104_p3, %s167_s7), 1 }
   0xe   : > { %s172_s8 = sshll.u32 %s211_s7, 3 }
   0xf   : > { %s107_s11 = scalar_lea.vmem %s208_s0, %s172_s8  ;;  %s111_s14 = scalar_lea.vmem %s209_s1, %s172_s8 }
  0x10   : > { %v112_v0 = vld [vmem:[%s107_s11] sm:$0xff] }
  0x11   : > { %113 = vst [vmem:[%s111_s14] sm:$0xff] %v112_v0 }
  0x12 PF: > { %s11_s6 = sadd.s32 1, %s190_s6  }
  0x13   : > { %p8_p4 = scmp.ge.s32.totalorder %s11_s6, 4  }
  0x15   :  { %10 = sbr.rel (!%p8_p4) target bundleno = 1 (0x1), region = 54 }

</bundles_post_ra>
